<compile_context>
chip_gen: v6e
topology: v6e:2x2x1
jax: 0.10.0
libtpu: 0.0.40
codegen_flags: <defaults>
</compile_context>

<pallas_src>
import functools

import jax
import jax.numpy as jnp
from jax import lax
from jax.experimental import pallas as pl
from jax.experimental.pallas import tpu as pltpu

EPS = 1e-5  # nn.BatchNorm1d default eps


# ----------------------------------------------------------------------------
# in-kernel helpers (operate on values / refs inside a grid step)
# ----------------------------------------------------------------------------
def _fill_padded(pad_ref, src, d):
    """Write src (C, L) into pad_ref (C, L+2d); zero only the 2*d halo lanes."""
    C, L = src.shape
    halo = jnp.zeros((C, d), jnp.float32)
    pad_ref[:, 0:d] = halo
    pad_ref[:, L + d:L + 2 * d] = halo
    pad_ref[:, d:d + L] = src


def _dilated_conv3(pad_ref, w_ref, b_ref, d):
    """3-tap dilated conv as 3 channel matmuls on the MXU.

    pad_ref: (C, L+2d) zero-haloed source
    w_ref  : (3, C_out, C_in) tap-major weights
    b_ref  : (C_out, 1) bias
    returns (C_out, L) float32
    """
    L = pad_ref.shape[1] - 2 * d
    z = jnp.dot(w_ref[0], pad_ref[:, 0:L],
                preferred_element_type=jnp.float32) + b_ref[...]
    z = z + jnp.dot(w_ref[1], pad_ref[:, d:d + L],
                    preferred_element_type=jnp.float32)
    z = z + jnp.dot(w_ref[2], pad_ref[:, 2 * d:2 * d + L],
                    preferred_element_type=jnp.float32)
    return z


# ----------------------------------------------------------------------------
# kernels
# ----------------------------------------------------------------------------
def _conv1_kernel(x_ref, w_ref, b_ref, z_ref, sum_ref, sq_ref, pad_ref, *,
                  dilation):
    """conv1 on one batch element + per-batch partial BN1 statistics."""
    d = dilation
    _fill_padded(pad_ref, x_ref[0], d)
    z = _dilated_conv3(pad_ref, w_ref, b_ref, d)
    z_ref[0] = z
    sum_ref[0] = jnp.sum(z, axis=1, keepdims=True)
    sq_ref[0] = jnp.sum(z * z, axis=1, keepdims=True)


def _bn_relu_conv2_kernel(z1_ref, scale_ref, shift_ref, w_ref, b_ref,
                          z_ref, sum_ref, sq_ref, pad_ref, *, dilation):
    """folded BN1 affine + ReLU + conv2 + per-batch partial BN2 statistics."""
    d = dilation
    h = jnp.maximum(z1_ref[0] * scale_ref[...] + shift_ref[...], 0.0)
    _fill_padded(pad_ref, h, d)
    z = _dilated_conv3(pad_ref, w_ref, b_ref, d)
    z_ref[0] = z
    sum_ref[0] = jnp.sum(z, axis=1, keepdims=True)
    sq_ref[0] = jnp.sum(z * z, axis=1, keepdims=True)


def _bn_residual_relu_kernel(z2_ref, x_ref, scale_ref, shift_ref, o_ref):
    """folded BN2 affine + residual add + ReLU."""
    o_ref[0] = jnp.maximum(
        z2_ref[0] * scale_ref[...] + shift_ref[...] + x_ref[0], 0.0)


# ----------------------------------------------------------------------------
# wrapper
# ----------------------------------------------------------------------------
def _fold_bn(sum_arr, sq_arr, gamma, beta, count):
    """Per-channel scale/shift from partial sums (tiny O(C) math)."""
    total_s = jnp.sum(sum_arr, axis=0)[:, 0]                  # (C,)
    total_q = jnp.sum(sq_arr, axis=0)[:, 0]                   # (C,)
    mean = total_s / count
    var = jnp.maximum(total_q / count - mean * mean, 0.0)     # biased batch var
    scale = gamma.astype(jnp.float32) * lax.rsqrt(var + EPS)
    shift = beta.astype(jnp.float32) - mean * scale
    return scale[:, None], shift[:, None]                     # (C, 1)


def residual_block_1d(x_ncl, params, dilation):
    """x_ncl: (N, C, L) float32, matching nn.Conv1d's NCL convention."""
    N, C, L = x_ncl.shape
    d = int(dilation)

    x = x_ncl.astype(jnp.float32)
    # PyTorch Conv1d weight (C_out, C_in, K) -> tap-major (K, C_out, C_in)
    w1 = jnp.transpose(params["w1"], (2, 0, 1)).astype(jnp.float32)
    w2 = jnp.transpose(params["w2"], (2, 0, 1)).astype(jnp.float32)
    b1 = params["b1"].reshape(C, 1).astype(jnp.float32)
    b2 = params["b2"].reshape(C, 1).astype(jnp.float32)

    cparams = pltpu.CompilerParams(dimension_semantics=("parallel",))
    scratch = [pltpu.VMEM((C, L + 2 * d), jnp.float32)]

    tile_spec = pl.BlockSpec((1, C, L), lambda n: (n, 0, 0))
    stat_spec = pl.BlockSpec((1, C, 1), lambda n: (n, 0, 0))
    w_spec = pl.BlockSpec((3, C, C), lambda n: (0, 0, 0))
    vec_spec = pl.BlockSpec((C, 1), lambda n: (0, 0))

    # ---- pass 1: conv1 + partial BN1 stats ---------------------------------
    z1, s1, q1 = pl.pallas_call(
        functools.partial(_conv1_kernel, dilation=d),
        grid=(N,),
        in_specs=[tile_spec, w_spec, vec_spec],
        out_specs=(tile_spec, stat_spec, stat_spec),
        out_shape=(jax.ShapeDtypeStruct((N, C, L), jnp.float32),
                   jax.ShapeDtypeStruct((N, C, 1), jnp.float32),
                   jax.ShapeDtypeStruct((N, C, 1), jnp.float32)),
        scratch_shapes=scratch,
        compiler_params=cparams,
    )(x, w1, b1)
    scale1, shift1 = _fold_bn(s1, q1, params["g1"], params["be1"], N * L)

    # ---- pass 2: BN1 affine + ReLU + conv2 + partial BN2 stats -------------
    z2, s2, q2 = pl.pallas_call(
        functools.partial(_bn_relu_conv2_kernel, dilation=d),
        grid=(N,),
        in_specs=[tile_spec, vec_spec, vec_spec, w_spec, vec_spec],
        out_specs=(tile_spec, stat_spec, stat_spec),
        out_shape=(jax.ShapeDtypeStruct((N, C, L), jnp.float32),
                   jax.ShapeDtypeStruct((N, C, 1), jnp.float32),
                   jax.ShapeDtypeStruct((N, C, 1), jnp.float32)),
        scratch_shapes=scratch,
        compiler_params=cparams,
    )(z1, scale1, shift1, w2, b2)
    scale2, shift2 = _fold_bn(s2, q2, params["g2"], params["be2"], N * L)

    # ---- pass 3: BN2 affine + residual add + ReLU --------------------------
    out = pl.pallas_call(
        _bn_residual_relu_kernel,
        grid=(N,),
        in_specs=[tile_spec, tile_spec, vec_spec, vec_spec],
        out_specs=tile_spec,
        out_shape=jax.ShapeDtypeStruct((N, C, L), jnp.float32),
        compiler_params=cparams,
    )(z2, x, scale2, shift2)
    return out


# ----------------------------------------------------------------------------
# pure-JAX reference (training-mode BatchNorm), mirrors the PyTorch forward
# ----------------------------------------------------------------------------
def reference_residual_block_1d(x_ncl, params, dilation):
    d = dilation

    def conv(x, w, b):
        y = lax.conv_general_dilated(
            x, w, window_strides=(1,), padding=[(d, d)], rhs_dilation=(d,),
            dimension_numbers=("NCH", "OIH", "NCH"))
        return y + b[None, :, None]

    def bn(x, g, be):
        mean = jnp.mean(x, axis=(0, 2), keepdims=True)
        var = jnp.mean((x - mean) ** 2, axis=(0, 2), keepdims=True)
        return (x - mean) * lax.rsqrt(var + EPS) * g[None, :, None] + be[None, :, None]

    h = jnp.maximum(bn(conv(x_ncl, params["w1"], params["b1"]),
                       params["g1"], params["be1"]), 0.0)
    out = bn(conv(h, params["w2"], params["b2"]), params["g2"], params["be2"])
    return jnp.maximum(out + x_ncl, 0.0)


if __name__ == "__main__":
    N, C, L = 2, 8, 16
    dilation = 2

    key = jax.random.PRNGKey(0)
    keys = jax.random.split(key, 9)

    params = {
        "w1": 0.2 * jax.random.normal(keys[0], (C, C, 3), jnp.float32),
        "b1": 0.1 * jax.random.normal(keys[1], (C,), jnp.float32),
        "g1": 1.0 + 0.1 * jax.random.normal(keys[2], (C,), jnp.float32),
        "be1": 0.1 * jax.random.normal(keys[3], (C,), jnp.float32),
        "w2": 0.2 * jax.random.normal(keys[4], (C, C, 3), jnp.float32),
        "b2": 0.1 * jax.random.normal(keys[5], (C,), jnp.float32),
        "g2": 1.0 + 0.1 * jax.random.normal(keys[6], (C,), jnp.float32),
        "be2": 0.1 * jax.random.normal(keys[7], (C,), jnp.float32),
    }
    x = jax.random.normal(keys[8], (N, C, L), jnp.float32)

    out = jax.block_until_ready(residual_block_1d(x, params, dilation))
    ref = jax.block_until_ready(reference_residual_block_1d(x, params, dilation))

    assert out.shape == (N, C, L)
    max_err = float(jnp.max(jnp.abs(out - ref)))
    assert jnp.allclose(out, ref, rtol=1e-4, atol=1e-4), f"max abs err = {max_err}"

    print("KERNEL_OK")
</pallas_src>

<mosaic_0001>
module attributes {stable_mosaic.version = 11 : i64} {
  func.func @_conv1_kernel(%arg0: i32, %arg1: memref<1x8x16xf32, #tpu.memory_space<vmem>>, %arg2: memref<3x8x8xf32, #tpu.memory_space<vmem>>, %arg3: memref<8x1xf32, #tpu.memory_space<vmem>>, %arg4: memref<1x8x16xf32, #tpu.memory_space<vmem>>, %arg5: memref<1x8x1xf32, #tpu.memory_space<vmem>>, %arg6: memref<1x8x1xf32, #tpu.memory_space<vmem>>, %arg7: memref<8x20xf32, #tpu.memory_space<vmem>>) attributes {dimension_semantics = [#tpu.dimension_semantics<parallel>], iteration_bounds = array<i64: 2>, scalar_prefetch = 0 : i64, scratch_operands = 1 : i64, tpu.core_type = #tpu.core_type<tc>, window_params = [{transform_indices = @transform_0, window_bounds = array<i64: 1, 8, 16>}, {pipeline_mode = #tpu.pipeline_mode<synchronous>, transform_indices = @transform_1, window_bounds = array<i64: 3, 8, 8>}, {pipeline_mode = #tpu.pipeline_mode<synchronous>, transform_indices = @transform_2, window_bounds = array<i64: 8, 1>}, {transform_indices = @transform_3, window_bounds = array<i64: 1, 8, 16>}, {transform_indices = @transform_4, window_bounds = array<i64: 1, 8, 1>}, {transform_indices = @transform_5, window_bounds = array<i64: 1, 8, 1>}]} {
    %c0 = arith.constant 0 : index
    %c0_0 = arith.constant 0 : index
    %c0_1 = arith.constant 0 : index
    %0 = vector.load %arg1[%c0, %c0_0, %c0_1] : memref<1x8x16xf32, #tpu.memory_space<vmem>>, vector<1x8x16xf32>
    %1 = vector.shape_cast %0 : vector<1x8x16xf32> to vector<8x16xf32>
    %cst = arith.constant 0.000000e+00 : f32
    %2 = vector.broadcast %cst : f32 to vector<8x2xf32>
    %c0_2 = arith.constant 0 : index
    %c0_3 = arith.constant 0 : index
    %3 = vector.load %arg7[%c0_2, %c0_3] : memref<8x20xf32, #tpu.memory_space<vmem>>, vector<8x2xf32>
    tpu.vector_store %arg7[%c0_2, %c0_3], %2 {strides = array<i32>} : memref<8x20xf32, #tpu.memory_space<vmem>>, vector<8x2xf32>,
    %c0_4 = arith.constant 0 : index
    %c18 = arith.constant 18 : index
    %4 = vector.load %arg7[%c0_4, %c18] : memref<8x20xf32, #tpu.memory_space<vmem>>, vector<8x2xf32>
    tpu.vector_store %arg7[%c0_4, %c18], %2 {strides = array<i32>} : memref<8x20xf32, #tpu.memory_space<vmem>>, vector<8x2xf32>,
    %c0_5 = arith.constant 0 : index
    %c2 = arith.constant 2 : index
    %5 = vector.load %arg7[%c0_5, %c2] : memref<8x20xf32, #tpu.memory_space<vmem>>, vector<8x16xf32>
    tpu.vector_store %arg7[%c0_5, %c2], %1 {strides = array<i32>} : memref<8x20xf32, #tpu.memory_space<vmem>>, vector<8x16xf32>,
    %c0_6 = arith.constant 0 : index
    %c0_7 = arith.constant 0 : index
    %c0_8 = arith.constant 0 : index
    %6 = vector.load %arg2[%c0_6, %c0_7, %c0_8] : memref<3x8x8xf32, #tpu.memory_space<vmem>>, vector<1x8x8xf32>
    %7 = vector.shape_cast %6 : vector<1x8x8xf32> to vector<8x8xf32>
    %c0_9 = arith.constant 0 : index
    %c0_10 = arith.constant 0 : index
    %8 = vector.load %arg7[%c0_9, %c0_10] : memref<8x20xf32, #tpu.memory_space<vmem>>, vector<8x16xf32>
    %cst_11 = arith.constant dense<0.000000e+00> : vector<8x16xf32>
    %9 = tpu.matmul %7, %8, %cst_11 {dimension_numbers = #tpu.dot_dimension_numbers<[1], [0], [0], [1], [0, 0, 1, 1], [], []>} : vector<8x8xf32>, vector<8x16xf32>, vector<8x16xf32> -> vector<8x16xf32>
    %c0_12 = arith.constant 0 : index
    %c0_13 = arith.constant 0 : index
    %10 = vector.load %arg3[%c0_12, %c0_13] : memref<8x1xf32, #tpu.memory_space<vmem>>, vector<8x1xf32>
    %11 = vector.broadcast %10 : vector<8x1xf32> to vector<8x16xf32>
    %12 = arith.addf %9, %11 : vector<8x16xf32>
    %c1 = arith.constant 1 : index
    %c0_14 = arith.constant 0 : index
    %c0_15 = arith.constant 0 : index
    %13 = vector.load %arg2[%c1, %c0_14, %c0_15] : memref<3x8x8xf32, #tpu.memory_space<vmem>>, vector<1x8x8xf32>
    %14 = vector.shape_cast %13 : vector<1x8x8xf32> to vector<8x8xf32>
    %c0_16 = arith.constant 0 : index
    %c2_17 = arith.constant 2 : index
    %15 = vector.load %arg7[%c0_16, %c2_17] : memref<8x20xf32, #tpu.memory_space<vmem>>, vector<8x16xf32>
    %cst_18 = arith.constant dense<0.000000e+00> : vector<8x16xf32>
    %16 = tpu.matmul %14, %15, %cst_18 {dimension_numbers = #tpu.dot_dimension_numbers<[1], [0], [0], [1], [0, 0, 1, 1], [], []>} : vector<8x8xf32>, vector<8x16xf32>, vector<8x16xf32> -> vector<8x16xf32>
    %17 = arith.addf %12, %16 : vector<8x16xf32>
    %c2_19 = arith.constant 2 : index
    %c0_20 = arith.constant 0 : index
    %c0_21 = arith.constant 0 : index
    %18 = vector.load %arg2[%c2_19, %c0_20, %c0_21] : memref<3x8x8xf32, #tpu.memory_space<vmem>>, vector<1x8x8xf32>
    %19 = vector.shape_cast %18 : vector<1x8x8xf32> to vector<8x8xf32>
    %c0_22 = arith.constant 0 : index
    %c4 = arith.constant 4 : index
    %20 = vector.load %arg7[%c0_22, %c4] : memref<8x20xf32, #tpu.memory_space<vmem>>, vector<8x16xf32>
    %cst_23 = arith.constant dense<0.000000e+00> : vector<8x16xf32>
    %21 = tpu.matmul %19, %20, %cst_23 {dimension_numbers = #tpu.dot_dimension_numbers<[1], [0], [0], [1], [0, 0, 1, 1], [], []>} : vector<8x8xf32>, vector<8x16xf32>, vector<8x16xf32> -> vector<8x16xf32>
    %22 = arith.addf %17, %21 : vector<8x16xf32>
    %c0_24 = arith.constant 0 : index
    %c0_25 = arith.constant 0 : index
    %c0_26 = arith.constant 0 : index
    %23 = vector.load %arg4[%c0_24, %c0_25, %c0_26] : memref<1x8x16xf32, #tpu.memory_space<vmem>>, vector<1x8x16xf32>
    %24 = vector.shape_cast %23 : vector<1x8x16xf32> to vector<8x16xf32>
    %25 = vector.shape_cast %22 : vector<8x16xf32> to vector<1x8x16xf32>
    tpu.vector_store %arg4[%c0_24, %c0_25, %c0_26], %25 {strides = array<i32>} : memref<1x8x16xf32, #tpu.memory_space<vmem>>, vector<1x8x16xf32>,
    %cst_27 = arith.constant dense<0.000000e+00> : vector<8xf32>
    %26 = vector.multi_reduction <add>, %22, %cst_27 [1] : vector<8x16xf32> to vector<8xf32>
    %27 = vector.shape_cast %26 : vector<8xf32> to vector<8x1xf32>
    %c0_28 = arith.constant 0 : index
    %c0_29 = arith.constant 0 : index
    %c0_30 = arith.constant 0 : index
    %28 = vector.load %arg5[%c0_28, %c0_29, %c0_30] : memref<1x8x1xf32, #tpu.memory_space<vmem>>, vector<1x8x1xf32>
    %29 = vector.shape_cast %28 : vector<1x8x1xf32> to vector<8x1xf32>
    %30 = vector.shape_cast %27 : vector<8x1xf32> to vector<1x8x1xf32>
    tpu.vector_store %arg5[%c0_28, %c0_29, %c0_30], %30 {strides = array<i32>} : memref<1x8x1xf32, #tpu.memory_space<vmem>>, vector<1x8x1xf32>,
    %31 = arith.mulf %22, %22 : vector<8x16xf32>
    %cst_31 = arith.constant dense<0.000000e+00> : vector<8xf32>
    %32 = vector.multi_reduction <add>, %31, %cst_31 [1] : vector<8x16xf32> to vector<8xf32>
    %33 = vector.shape_cast %32 : vector<8xf32> to vector<8x1xf32>
    %c0_32 = arith.constant 0 : index
    %c0_33 = arith.constant 0 : index
    %c0_34 = arith.constant 0 : index
    %34 = vector.load %arg6[%c0_32, %c0_33, %c0_34] : memref<1x8x1xf32, #tpu.memory_space<vmem>>, vector<1x8x1xf32>
    %35 = vector.shape_cast %34 : vector<1x8x1xf32> to vector<8x1xf32>
    %36 = vector.shape_cast %33 : vector<8x1xf32> to vector<1x8x1xf32>
    tpu.vector_store %arg6[%c0_32, %c0_33, %c0_34], %36 {strides = array<i32>} : memref<1x8x1xf32, #tpu.memory_space<vmem>>, vector<1x8x1xf32>,
    return
  }
  func.func @transform_0(%arg0: i32) -> (i32, i32, i32) {
    %c0_i32 = arith.constant 0 : i32
    %c0_i32_0 = arith.constant 0 : i32
    %c0_i32_1 = arith.constant 0 : i32
    return %arg0, %c0_i32, %c0_i32_0 : i32, i32, i32
  }
  func.func @transform_1(%arg0: i32) -> (i32, i32, i32) {
    %c0_i32 = arith.constant 0 : i32
    %c0_i32_0 = arith.constant 0 : i32
    %c0_i32_1 = arith.constant 0 : i32
    %c0_i32_2 = arith.constant 0 : i32
    return %c0_i32, %c0_i32_0, %c0_i32_1 : i32, i32, i32
  }
  func.func @transform_2(%arg0: i32) -> (i32, i32) {
    %c0_i32 = arith.constant 0 : i32
    %c0_i32_0 = arith.constant 0 : i32
    %c0_i32_1 = arith.constant 0 : i32
    return %c0_i32, %c0_i32_0 : i32, i32
  }
  func.func @transform_3(%arg0: i32) -> (i32, i32, i32) {
    %c0_i32 = arith.constant 0 : i32
    %c0_i32_0 = arith.constant 0 : i32
    %c0_i32_1 = arith.constant 0 : i32
    return %arg0, %c0_i32, %c0_i32_0 : i32, i32, i32
  }
  func.func @transform_4(%arg0: i32) -> (i32, i32, i32) {
    %c0_i32 = arith.constant 0 : i32
    %c0_i32_0 = arith.constant 0 : i32
    %c0_i32_1 = arith.constant 0 : i32
    return %arg0, %c0_i32, %c0_i32_0 : i32, i32, i32
  }
  func.func @transform_5(%arg0: i32) -> (i32, i32, i32) {
    %c0_i32 = arith.constant 0 : i32
    %c0_i32_0 = arith.constant 0 : i32
    %c0_i32_1 = arith.constant 0 : i32
    return %arg0, %c0_i32, %c0_i32_0 : i32, i32, i32
  }
}

</mosaic_0001>

<bundles_post_ra>
// kernel: tpu_custom_call.1
= control target key start
LH: loop header
LB: loop body
LE: loop exit
PB: predicated region body
PF: predicated region fallthrough
CT: control target
= control target key end

     0   :  { %11 = vsyncpa [#allocation4], 0  ;;  %s1143_s0 = inlined_call_operand.hbm [shape: f32[2,8,16], index: 0, kind: input, shape index: {}]   ;;  %s1144_s1 = inlined_call_operand.hbm [shape: f32[3,8,8], index: 1, kind: input, shape index: {}]   ;;  %s1145_s2 = inlined_call_operand.vmem [shape: f32[8,1], index: 2, kind: input, shape index: {}]   ;;  %s1146_s3 = inlined_call_operand.hbm [shape: f32[2,8,16], index: 3, kind: output, shape index: {0}]   ;;  %s1147_s4 = inlined_call_operand.vmem [shape: f32[2,8,1], index: 4, kind: output, shape index: {1}]   ;;  %s1148_s5 = inlined_call_operand.vmem [shape: f32[2,8,1], index: 5, kind: output, shape index: {2}]  }
   0x1   :  { %13 = vsyncpa [#allocation4 + $0x1], 0 }
   0x2   :  { %14 = vsyncpa [#allocation7], 0 }
   0x3   :  { %15 = vsyncpa [#allocation5], 0 }
   0x4   :  { %17 = vsyncpa [#allocation5 + $0x1], 0  ;;  %s968_s18 = smov 0   ;;  %s970_s19 = smov 0  }
   0x5   :  { %s972_s20 = smov 0   ;;  %s974_s21 = smov 0  }
   0x6 LB: > { %s989_s22 = sadd.s32 4294967295, %s925_s21   ;;  %s696_s23 = sadd.s32 4294967294, %s925_s21   ;;  %s925_s21 = sphi %s974_s21, %s1170_s21   ;;  %s921_s20 = sphi %s972_s20, %s1169_s20   ;;  %s917_s19 = sphi %s970_s19, %s1168_s19   ;;  %s913_s18 = sphi %s968_s18, %s1167_s18  }
   0x7   : > { %p43_p0 = scmp.ne.s32.totalorder %s917_s19, %s913_s18  ;;  %p1149_p1 = scmp.eq.s32.totalorder %s989_s22, 0 }
   0x8   : > { %p115_p3 = scmp.eq.s32.totalorder %s696_s23, 1  ;;  %p697_p5 = scmp.ge.s32.totalorder %s925_s21, 1 }
   0x9   : > { %p998_p4 = por %p1149_p1, %p43_p0  ;;  %p174_p7 = scmp.lt.s32.totalorder %s925_s21, 3 }
   0xa   : > { %p1003_p6 = por %p115_p3, %p43_p0  ;;  %s927_s27 = smov [#allocation6]  }
   0xb   : > { %s1153_s24 = scalar_select %p998_p4, 1, 0 }
   0xc   : > { %s1154_s25 = scalar_select %p1003_p6, 1, 0 }
   0xd   : > { %p1008_p8 = pnand %p697_p5, %p174_p7  ;;  %s186_s28 = sshll.u32 %s927_s27, 4  ;;  %s187_s28 = int_to_ptr.vmem [resolvable:$true] %s186_s28 }
   0xe   : > { %s1022_s30 = sadd.s32 1, %s925_s21   ;;  %s30_s6 = sadd.s32 1, %s921_s20 }
   0xf   : > { %s1155_s26 = scalar_select %p1008_p8, 1, 0 }
  0x10   : > { %p744_p9 = pneg %p1008_p8  ;;  %s27_s7 = ssub.s32 %s925_s21, %s1022_s30 }
  0x11   : > { %s814_s8 = scalar_lea.vmem %s187_s28, 384  ;;  %p822_p5 = scmp.lt.s32.totalorder %s187_s28, %s187_s28 }
  0x12   : > { %p1017_p11 = pnand %p744_p9, %p1149_p1  ;;  %p815_p13 = scmp.ne.s32.totalorder %s187_s28, %s814_s8 }
  0x13   : > { %p823_p7 = scmp.lt.s32.totalorder %s814_s8, %s814_s8 }
  0x14   : > { %p805_p12 = pneg %p1017_p11 }
  0x15   : > { %p824_p10 = por %p823_p7, %p822_p5 }
  0x16   : > { %p817_p0 = pnand %p815_p13, %p805_p12 }
  0x18   : > { %p818_p3 = pneg %p817_p0 }
  0x1a   : > { %p825_p2 = pnand %p824_p10, %p818_p3 }
  0x1c   : > { %828 = shalt.err (!%p825_p2)
}
  0x1d   : > { %s928_s9 = smov 128   ;;  %s929_s10 = smov 8  }
  0x1e   : > { %747 = dma.hbm_to_vmem [thread:$0]  (!%p1017_p11), %s1144_s1, 384, %s187_s28, [#allocation7], %s928_s9, %s928_s9, %s929_s10  }
  0x1f   : > { %p28_p9 = scmp.eq.s32.totalorder %s27_s7, 0  ;;  %p37_p12 = scmp.ne.s32.totalorder %s921_s20, %s917_s19 }
  0x20   : > { %p38_p10 = scmp.eq.s32.totalorder %s925_s21, 0  ;;  %p757_p2 = scmp.lt.s32.totalorder %s925_s21, 2 }
  0x21   : > { %s1039_s13 = scalar_select %p28_p9, %s921_s20, %s30_s6  }
  0x22   : > { %p39_p13 = por %p38_p10, %p37_p12  ;;  %p1157_p0 = scmp.eq.s32.totalorder %s989_s22, 1 }
  0x23   : > { %s203_s15 = sand.u32 1, %s921_s20   ;;  %s701_s16 = sshll.u32 %s925_s21, 7 }
  0x24   : > { %p1043_p3 = por %p1157_p0, %p37_p12  ;;  %s700_s17 = sshll.u32 %s203_s15, 3 }
  0x25   : > { %s1052_s29 = scalar_lea.hbm %s1143_s0, %s701_s16  ;;  %s207_s28 = scalar_lea.vmem [#allocation3], %s700_s17 }
  0x26   : > { %s1158_s14 = scalar_select %p1043_p3, 1, 0 }
  0x27   : > { %s214_s6 = sshll.u32 %s207_s28, 4  ;;  %p1054_p11 = pnand %p757_p2, %p39_p13  ;;  %s215_s6 = int_to_ptr.vmem [resolvable:$true] %s214_s6 }
  0x28   : > { %s204_s8 = scalar_lea.sflag [#allocation4], %s203_s15  ;;  %s829_s9 = scalar_lea.hbm %s1052_s29, 128 }
  0x29   : > { %p830_p5 = scmp.ne.s32.totalorder %s1052_s29, %s829_s9  ;;  %p831_p7 = pneg %p1054_p11 }
  0x2a   : > { %s834_s12 = scalar_lea.hbm %s1143_s0, 256  ;;  %p835_p10 = scmp.lt.s32.totalorder %s1052_s29, %s1143_s0 }
  0x2b   : > { %p832_p9 = pnand %p831_p7, %p830_p5  ;;  %p836_p2 = scmp.lt.s32.totalorder %s834_s12, %s829_s9 }
  0x2d   : > { %p833_p12 = pneg %p832_p9  ;;  %p837_p13 = por %p836_p2, %p835_p10 }
  0x2f   : > { %p838_p0 = pnand %p837_p13, %p833_p12 }
  0x31   : > { %841 = shalt.err (!%p838_p0)
}
  0x32   : > { %s842_s23 = scalar_lea.vmem %s215_s6, 128  ;;  %s930_s15 = smov [#allocation3]  }
  0x33   : > { %p843_p1 = scmp.ne.s32.totalorder %s215_s6, %s842_s23  ;;  %s847_s27 = sshll.u32 %s930_s15, 4  ;;  %s848_s27 = int_to_ptr.vmem [resolvable:$false] %s847_s27 }
  0x34   : > { %s849_s28 = scalar_lea.vmem %s848_s27, 256  ;;  %p850_p5 = scmp.lt.s32.totalorder %s215_s6, %s848_s27 }
  0x35   : > { %p845_p6 = pnand %p843_p1, %p831_p7  ;;  %p851_p9 = scmp.lt.s32.totalorder %s849_s28, %s842_s23 }
  0x37   : > { %p846_p3 = pneg %p845_p6  ;;  %p852_p4 = por %p851_p9, %p850_p5 }
  0x39   : > { %p853_p8 = pnand %p852_p4, %p846_p3 }
  0x3b   : > { %856 = shalt.err (!%p853_p8)
}
  0x3c   : > { %751 = dma.hbm_to_vmem [thread:$0]  (!%p1054_p11), %s1052_s29, 128, %s215_s6, %s204_s8  }
  0x3d   : > { %p1160_p12 = scmp.ne.s32.totalorder %s1155_s26, 0 }
  0x3e   : > { %s1075_s9 = sand.u32 (!%p1160_p12), 1, %s917_s19   ;;  %p1161_p1 = scmp.ne.s32.totalorder (!%p1160_p12), %s1153_s24, 0 }
  0x3f   : > { %223 = sbr.rel (%p1160_p12) target bundleno = 653 (0x28d), region = 32  ;;  %s703_s10 = sshll.u32 (!%p1160_p12), %s1075_s9, 3 }
  0x40   : > { %s226_s11 = scalar_lea.sflag (!%p1160_p12), [#allocation4], %s1075_s9  ;;  %s229_s12 = scalar_lea.vmem (!%p1160_p12), [#allocation3], %s703_s10 }
  0x44   : > { %900 = dma.done.wait (%p1161_p1), %s226_s11, 128  }
  0x45   : > { %902 = vsyncadd (%p1161_p1), %s226_s11, 4294967168  ;;  %p1162_p4 = scmp.eq.s32.totalorder %s989_s22, 0 }
  0x47   : > { %904 = dma.done.wait (%p1162_p4), [#allocation7], 384   ;;  %p1163_p6 = pmov %p1162_p4 }
  0x48   : > { %vm277_vm0 = vcmask 15360   ;;  %vm279_vm1 = vcmask 162960   ;;  %v931_v0 = vmov 0.0   ;;  %vm932_vm2 = vmmov 0   ;;  %v276_v1 = vld [vmem:[%s229_s12] sm:$0xff]  ;;  %s933_s24 = smov 2  }
  0x49   : > { %906 = vsyncadd (%p1163_p6), [#allocation7], 4294966912  ;;  %278 = vst.msk [vmem:[#allocation2] sm:$0xff] %vm277_vm0, %v931_v0  ;;  %721 = vmatprep.subr.mxu0 %v931_v0  ;;  %726 = vmatprep.subr.mxu1 %v931_v0  ;;  %vm285_vm3 = vcmask 146448   ;;  %v934_v2 = vmov 0   ;;  %v287_v5 = vld [vmem:[#allocation6] sm:$0xff] }
  0x4a   : > { %280 = vst.msk [vmem:[#allocation2] sm:$0xff] %vm279_vm1, %v931_v0  ;;  %723 = vmatprep.mubr.msk.f32.mxu0 %vm932_vm2, %v931_v0  ;;  %728 = vmatprep.mubr.msk.f32.mxu1 %vm932_vm2, %v931_v0  ;;  %vm295_vm4 = vcmask 64512   ;;  %s935_s26 = smov 124   ;;  %s936_s29 = smov 126   ;;  %v289_v6 = vld [vmem:[%s1145_s2] sm:$0xff]  ;;  %v450_v8 = vld [vmem:[#allocation6 + $0x10] sm:$0xff] }
  0x4b   : > { %282 = vrot.lane.b32.xlu0 %v276_v1, %s933_s24  ;;  %801 = vset.pattern.permute.xlu1 %v934_v2  ;;  %v370_v7 = vld [vmem:[#allocation6 + $0x8] sm:$0xff]  ;;  %vm528_vm5 = vcmask 130048   ;;  %s255_s8 = scalar_lea.vmem [#allocation8], %s703_s10  ;;  %s712_s16 = sshll.u32 %s989_s22, 7 }
  0x4c   : > { %802 = vset.pattern.permute.xlu0 %v934_v2  ;;  %s562_s17 = sshll.u32 %s255_s8, 4  ;;  %s560_s27 = scalar_lea.hbm %s1146_s3, %s712_s16  ;;  %s563_s17 = int_to_ptr.vmem [resolvable:$true] %s562_s17 }
  0x4d   : > { %s541_s28 = scalar_lea.sflag [#allocation5], %s1075_s9  ;;  %s857_s11 = scalar_lea.vmem %s563_s17, 128 }
  0x4e   : > { %p858_p8 = scmp.ne.s32.totalorder %s563_s17, %s857_s11  ;;  %p1164_p3 = scmp.ne.s32.totalorder %s1158_s14, 0 }
  0x4f   : > { %s937_s12 = smov [#allocation8]  }
  0x50   : > { %p859_p11 = pnand %p858_p8, %p1164_p3  ;;  %s861_s24 = sshll.u32 %s937_s12, 4  ;;  %s862_s24 = int_to_ptr.vmem [resolvable:$false] %s861_s24 }
  0x51   : > { %s863_s10 = scalar_lea.vmem %s862_s24, 256  ;;  %p864_p10 = scmp.lt.s32.totalorder %s563_s17, %s862_s24 }
  0x52   : > { %p860_p7 = pneg %p859_p11  ;;  %p865_p2 = scmp.lt.s32.totalorder %s863_s10, %s857_s11 }
  0x54   : > { %p866_p13 = por %p865_p2, %p864_p10 }
  0x56   : > { %p867_p0 = pnand %p866_p13, %p860_p7 }
  0xbd   : > { %v283_v3 = vpop.permute.xlu0 %282 }
  0xbe   : > { %286 = vst.msk [vmem:[#allocation2] sm:$0xff] %vm285_vm3, %v283_v3 }
  0xc5   : > { %v288_v4 = vld [vmem:[#allocation2] sm:$0xff] }
  0xc6   : > { %451 = vrot.lane.b32.xlu1 %v288_v4, %s935_s26  ;;  %372 = vrot.lane.b32.xlu0 %v288_v4, %s936_s29 }
  0xc7   : > { %722 = vmatpush3.msra.mxu0 %v288_v4 }
  0xc8   : > { %724 = vmatmul.mubr.msk.f32.vlgmr.msra.gmra.mxu0 %vm295_vm4, %v287_v5  ;;  %731 = vmatprep.subr.mxu0 %v931_v0 }
  0xc9   : > { %733 = vmatprep.mubr.msk.f32.mxu0 %vm932_vm2, %v931_v0 }
  0xca   : > { %292 = vperm.xlu1 %801, %v289_v6  }
 0x138   : > { %v452_v9 = vpop.permute.xlu1 %451  ;;  %v373_v10 = vpop.permute.xlu0 %372 }
 0x139   : > { %727 = vmatpush3.msra.mxu1 %v373_v10  ;;  %732 = vmatpush3.msra.mxu0 %v452_v9 }
 0x13a   : > { %729 = vmatmul.mubr.msk.f32.vlgmr.msra.gmra.mxu1 %vm295_vm4, %v370_v7  ;;  %734 = vmatmul.mubr.msk.f32.vlgmr.msra.gmra.mxu0 %vm295_vm4, %v450_v8 }
 0x145   : > { %v293_v13 = vpop.permute.xlu1 %292 }
 0x188   : > { %v365_v11 = vpop.f32.mrf.mxu0 }
 0x189   : > { %v366_v14 = vadd.f32 %v365_v11, %v293_v13 }
 0x18a   : > { %v725_v12 = vpop.f32.mrf.mxu0 }
 0x1fa   : > { %v444_v15 = vpop.f32.mrf.mxu1  ;;  %v523_v16 = vpop.f32.mrf.mxu0 }
 0x1fb   : > { %v448_v17 = vadd.f32 %v444_v15, %v366_v14 }
 0x1fc   : > { %v730_v18 = vpop.f32.mrf.mxu1  ;;  %v735_v19 = vpop.f32.mrf.mxu0 }
 0x1fd   : > { %v527_v20 = vadd.f32 %v523_v16, %v448_v17 }
 0x1ff   : > { %v530_v21 = vsel %vm528_vm5, %v527_v20, 0.0  ;;  %v535_v22 = vmul.f32 %v527_v20, %v527_v20  ;;  %529 = vst.msk [vmem:[%s255_s8] sm:$0xff] %vm528_vm5, %v527_v20 }
 0x200   : > { %531 = vadd.xlane.f32.xlu0 %v530_v21 }
 0x201   : > { %v536_v23 = vsel %vm528_vm5, %v535_v22, 0.0 }
 0x202   : > { %537 = vadd.xlane.f32.xlu1 %v536_v23 }
 0x203   : > { %870 = shalt.err (!%p867_p0)
}
 0x204   : > { %s871_s26 = scalar_lea.hbm %s560_s27, 128  ;;  %s875_s6 = scalar_lea.hbm %s1146_s3, 256 }
 0x205   : > { %p872_p5 = scmp.ne.s32.totalorder %s560_s27, %s871_s26  ;;  %p876_p1 = scmp.lt.s32.totalorder %s560_s27, %s1146_s3 }
 0x206   : > { %p877_p4 = scmp.lt.s32.totalorder %s875_s6, %s871_s26 }
 0x207   : > { %p873_p9 = pnand %p872_p5, %p1164_p3 }
 0x208   : > { %p878_p6 = por %p877_p4, %p876_p1 }
 0x209   : > { %p874_p12 = pneg %p873_p9 }
 0x20b   : > { %p879_p8 = pnand %p878_p6, %p874_p12 }
 0x20d   : > { %882 = shalt.err (!%p879_p8)
}
 0x20e   : > { %742 = dma.vmem_to_hbm [thread:$0]  (%p1164_p3), %s563_s17, 128, %s560_s27, %s541_s28   ;;  %vm533_vm6 = vcmask 7168  }
 0x20f   : > { %p268_p11 = scmp.lt.s32.totalorder %s989_s22, 1 }
 0x211   : > { %s1172_s22 = smov (!%p268_p11, %s989_s22), 1 }
 0x212   : > { %s706_s16 = sshll.u32 %s1172_s22, 3 }
 0x213   : > { %s271_s11 = scalar_lea.vmem %s1147_s4, %s706_s16  ;;  %s275_s10 = scalar_lea.vmem %s1148_s5, %s706_s16 }
 0x289   : > { %v532_v24 = vpop.xlane.xlu0 %531 }
 0x28a   : > { %534 = vst.msk [vmem:[%s271_s11] sm:$0xff] %vm533_vm6, %v532_v24 }
 0x28b   : > { %v538_v25 = vpop.xlane.xlu1 %537 }
 0x28c   : > { %539 = vst.msk [vmem:[%s275_s10] sm:$0xff] %vm533_vm6, %v538_v25 }
 0x28d PF: > { %s580_s14 = sand.u32 1, %s913_s18   ;;  %p1165_p3 = scmp.ne.s32.totalorder %s1154_s25, 0 }
 0x28e   : > { %p1166_p7 = scmp.ge.s32.totalorder %s925_s21, 2  ;;  %s581_s22 = scalar_lea.sflag [#allocation5], %s580_s14 }
 0x290   : > { %p753_p10 = pnand %p1166_p7, %p1165_p3 }
 0x292   : > { %p754_p2 = pneg %p753_p10 }
 0x294   : > { %908 = dma.done.wait (%p754_p2), %s581_s22, 128  }
 0x295   : > { %910 = vsyncadd (%p754_p2), %s581_s22, 4294967168  ;;  %p20_p13 = scmp.ge.s32.totalorder %s1022_s30, 4   ;;  %s1167_s18 = smov %s917_s19 }
 0x296   : > { %s1168_s19 = smov %s921_s20  ;;  %s1169_s20 = smov %s1039_s13 }
 0x297   : > { %s1170_s21 = smov %s1022_s30  ;;  %22 = sbr.rel (!%p20_p13) target bundleno = 6 (0x6), region = 107 }
 0x29c   :  { %600 = vsyncpa [#allocation4], 1 }
 0x29d   :  { %602 = vsyncpa [#allocation4 + $0x1], 1 }
 0x29e   :  { %603 = vsyncpa [#allocation7], 1 }
 0x29f   :  { %604 = vsyncpa [#allocation5], 1 }
 0x2a0   :  { %606 = vsyncpa [#allocation5 + $0x1], 1 }

</bundles_post_ra>
